<compile_context>
chip_gen: v7x
topology: tpu7x:2x2x1
jax: 0.10.0
libtpu: 0.0.40
codegen_flags: <defaults>
</compile_context>

<pallas_src>
import functools
import math

import jax
import jax.numpy as jnp
from jax.experimental import pallas as pl
from jax.experimental.pallas import tpu as pltpu


def _round_up(x, m):
    return ((x + m - 1) // m) * m


def _relu(a):
    return jnp.maximum(a, 0.0)


def _fused_mlp_kernel(*refs, num_layers, compute_dtype, hidden_activation,
                      output_activation):
    # refs = (x, w0, b0, w1, b1, ..., w_{L-1}, b_{L-1}, out)
    x_ref = refs[0]
    o_ref = refs[-1]

    h = x_ref[...].astype(compute_dtype)
    for i in range(num_layers):
        w_ref = refs[1 + 2 * i]
        b_ref = refs[2 + 2 * i]
        # Bias folded into accumulator init; f32 accumulation on the MXU.
        acc = b_ref[...].astype(jnp.float32) + jnp.dot(
            h, w_ref[...], preferred_element_type=jnp.float32)
        if i < num_layers - 1:
            acc = hidden_activation(acc)
            h = acc.astype(compute_dtype)       # back to MXU dtype for next layer
        else:
            h = acc
    if output_activation is not None:
        h = output_activation(h)
    o_ref[...] = h.astype(o_ref.dtype)


def prepare_ffnetwork_params(params, compute_dtype=jnp.bfloat16):
    """Pad weights/biases to 128-multiples and cast weights to compute_dtype.

    Call ONCE at init (outside the per-step hot path). Returns (padded, meta).
    params: list of (w: (d_in, d_out), b: (d_out,)) unpadded f32 arrays.
    """
    padded = []
    for w, b in params:
        d_in, d_out = w.shape
        wp = jnp.zeros((_round_up(d_in, 128), _round_up(d_out, 128)), compute_dtype)
        wp = wp.at[:d_in, :d_out].set(w.astype(compute_dtype))
        bp = jnp.zeros((1, _round_up(d_out, 128)), jnp.float32)
        bp = bp.at[0, :d_out].set(b.astype(jnp.float32))
        padded.append((wp, bp))
    meta = dict(in_dim=params[0][0].shape[0],
                out_dim=params[-1][0].shape[1],
                compute_dtype=compute_dtype)
    return padded, meta


def ffnetwork_forward(padded_params, meta, x, hidden_activation=None,
                      output_activation=None, block_m=None):
    """Fused MLP forward matching FFNetwork.forward.

    padded_params / meta come from prepare_ffnetwork_params (hoisted padding).
    Activations must be elementwise.  x: (B, in_dim) float array.
    """
    if hidden_activation is None:
        hidden_activation = _relu

    num_layers = len(padded_params)
    B, d_in = x.shape
    assert d_in == meta["in_dim"]
    d_out = meta["out_dim"]
    compute_dtype = meta["compute_dtype"]

    d_in_pad = padded_params[0][0].shape[0]
    d_out_pad = padded_params[-1][0].shape[1]

    # Batch (M) tiling — the only per-call padding left in the hot path is x.
    tm = block_m if block_m is not None else min(256, _round_up(B, 16))
    tm = _round_up(tm, 16)
    m_pad = _round_up(B, tm)
    x_pad = jnp.zeros((m_pad, d_in_pad), x.dtype).at[:B, :d_in].set(x)

    flat_wb = []
    in_specs = [pl.BlockSpec((tm, d_in_pad), lambda i: (i, 0))]
    for wp, bp in padded_params:
        flat_wb += [wp, bp]
        # Constant block index: weights/biases are DMA'd once and stay
        # resident in VMEM across all M tiles.
        in_specs.append(pl.BlockSpec(wp.shape, lambda i: (0, 0)))
        in_specs.append(pl.BlockSpec(bp.shape, lambda i: (0, 0)))
    out_spec = pl.BlockSpec((tm, d_out_pad), lambda i: (i, 0))

    kernel = functools.partial(
        _fused_mlp_kernel, num_layers=num_layers, compute_dtype=compute_dtype,
        hidden_activation=hidden_activation, output_activation=output_activation)

    itemsize = lambda a: jnp.dtype(a.dtype).itemsize
    param_bytes = sum(w.size * itemsize(w) + b.size * itemsize(b)
                      for w, b in padded_params)
    widest = max(d_in_pad, max(w.shape[1] for w, _ in padded_params))
    io_bytes = 2 * tm * d_in_pad * itemsize(x_pad) + 2 * tm * d_out_pad * itemsize(x)
    act_bytes = 4 * tm * widest * 4  # f32 intermediates (few live copies)
    vmem_limit = min(
        128 << 20,
        max(int(1.25 * (2 * param_bytes + io_bytes + act_bytes)), 16 << 20))

    flops = 2 * m_pad * sum(w.shape[0] * w.shape[1] for w, _ in padded_params)
    bytes_accessed = (param_bytes + x_pad.size * itemsize(x_pad)
                      + m_pad * d_out_pad * itemsize(x))

    out_pad = pl.pallas_call(
        kernel,
        out_shape=jax.ShapeDtypeStruct((m_pad, d_out_pad), x.dtype),
        grid=(m_pad // tm,),
        in_specs=in_specs,
        out_specs=out_spec,
        compiler_params=pltpu.CompilerParams(
            dimension_semantics=("parallel",),  # lets v7x shard M tiles over 2 TCs
            vmem_limit_bytes=vmem_limit),
        cost_estimate=pl.CostEstimate(flops=flops, transcendentals=0,
                                      bytes_accessed=bytes_accessed),
    )(x_pad, *flat_wb)

    return out_pad[:B, :d_out]


def init_ffnetwork_params(key, layers):
    """nn.Linear-style init: U(-1/sqrt(fan_in), 1/sqrt(fan_in)); weights stored
    as (D_in, D_out) (PyTorch (out, in) transposed)."""
    params = []
    for i in range(len(layers) - 1):
        d_in, d_out = layers[i], layers[i + 1]
        key, kw, kb = jax.random.split(key, 3)
        bound = 1.0 / math.sqrt(d_in)
        w = jax.random.uniform(kw, (d_in, d_out), jnp.float32, -bound, bound)
        b = jax.random.uniform(kb, (d_out,), jnp.float32, -bound, bound)
        params.append((w, b))
    return params


def ffnetwork_reference(params, x, hidden_activation=None, output_activation=None):
    """Pure-JAX f32 reference matching FFNetwork.forward."""
    if hidden_activation is None:
        hidden_activation = _relu
    n = len(params)
    h = x
    for i, (w, b) in enumerate(params):
        h = h @ w + b
        if i != n - 1:
            h = hidden_activation(h)
        elif output_activation is not None:
            h = output_activation(h)
    return h


if __name__ == "__main__":
    layers = [32, 64, 64, 16]  # input dim, two hidden dims, output dim

    key = jax.random.PRNGKey(0)
    key, kp = jax.random.split(key)
    params = init_ffnetwork_params(kp, layers)

    # --- exact path: f32 compute dtype, single M tile ---------------------
    key, kx = jax.random.split(key)
    x = jax.random.normal(kx, (8, layers[0]), jnp.float32)
    padded_f32, meta_f32 = prepare_ffnetwork_params(params, compute_dtype=jnp.float32)
    out = jax.block_until_ready(ffnetwork_forward(padded_f32, meta_f32, x))
    ref = ffnetwork_reference(params, x)
    assert out.shape == (8, layers[-1])
    assert jnp.allclose(out, ref, atol=1e-5, rtol=1e-5), "f32 path mismatch"

    # --- fast path: bf16 MXU inputs / f32 accumulation, multi-tile grid ----
    key, kx2 = jax.random.split(key)
    x2 = jax.random.normal(kx2, (40, layers[0]), jnp.float32)
    padded_bf16, meta_bf16 = prepare_ffnetwork_params(params)  # bf16 default
    out2 = jax.block_until_ready(
        ffnetwork_forward(padded_bf16, meta_bf16, x2, block_m=16))
    ref2 = ffnetwork_reference(params, x2)
    assert out2.shape == (40, layers[-1])
    assert jnp.allclose(out2, ref2, atol=3e-2, rtol=3e-2), "bf16 path mismatch"

    print("KERNEL_OK")
</pallas_src>

<mosaic_0001>
module attributes {stable_mosaic.version = 11 : i64} {
  func.func @_fused_mlp_kernel(%arg0: i32, %arg1: memref<16x128xf32, #tpu.memory_space<vmem>>, %arg2: memref<128x128xf32, #tpu.memory_space<vmem>>, %arg3: memref<1x128xf32, #tpu.memory_space<vmem>>, %arg4: memref<128x128xf32, #tpu.memory_space<vmem>>, %arg5: memref<1x128xf32, #tpu.memory_space<vmem>>, %arg6: memref<128x128xf32, #tpu.memory_space<vmem>>, %arg7: memref<1x128xf32, #tpu.memory_space<vmem>>, %arg8: memref<16x128xf32, #tpu.memory_space<vmem>>) attributes {dimension_semantics = [#tpu.dimension_semantics<parallel>], iteration_bounds = array<i64: 1>, scalar_prefetch = 0 : i64, scratch_operands = 0 : i64, tpu.core_type = #tpu.core_type<tc>, window_params = [{transform_indices = @transform_0, window_bounds = array<i64: 16, 128>}, {pipeline_mode = #tpu.pipeline_mode<synchronous>, transform_indices = @transform_1, window_bounds = array<i64: 128, 128>}, {pipeline_mode = #tpu.pipeline_mode<synchronous>, transform_indices = @transform_2, window_bounds = array<i64: 1, 128>}, {pipeline_mode = #tpu.pipeline_mode<synchronous>, transform_indices = @transform_3, window_bounds = array<i64: 128, 128>}, {pipeline_mode = #tpu.pipeline_mode<synchronous>, transform_indices = @transform_4, window_bounds = array<i64: 1, 128>}, {pipeline_mode = #tpu.pipeline_mode<synchronous>, transform_indices = @transform_5, window_bounds = array<i64: 128, 128>}, {pipeline_mode = #tpu.pipeline_mode<synchronous>, transform_indices = @transform_6, window_bounds = array<i64: 1, 128>}, {transform_indices = @transform_7, window_bounds = array<i64: 16, 128>}]} {
    %c0 = arith.constant 0 : index
    %c0_0 = arith.constant 0 : index
    %0 = vector.load %arg1[%c0, %c0_0] : memref<16x128xf32, #tpu.memory_space<vmem>>, vector<16x128xf32>
    %c0_1 = arith.constant 0 : index
    %c0_2 = arith.constant 0 : index
    %1 = vector.load %arg3[%c0_1, %c0_2] : memref<1x128xf32, #tpu.memory_space<vmem>>, vector<1x128xf32>
    %c0_3 = arith.constant 0 : index
    %c0_4 = arith.constant 0 : index
    %2 = vector.load %arg2[%c0_3, %c0_4] : memref<128x128xf32, #tpu.memory_space<vmem>>, vector<128x128xf32>
    %cst = arith.constant dense<0.000000e+00> : vector<16x128xf32>
    %3 = tpu.matmul %0, %2, %cst {dimension_numbers = #tpu.dot_dimension_numbers<[1], [0], [0], [1], [0, 0, 1, 1], [], []>} : vector<16x128xf32>, vector<128x128xf32>, vector<16x128xf32> -> vector<16x128xf32>
    %4 = vector.broadcast %1 : vector<1x128xf32> to vector<16x128xf32>
    %5 = arith.addf %4, %3 : vector<16x128xf32>
    %cst_5 = arith.constant 0.000000e+00 : f32
    %6 = vector.broadcast %cst_5 : f32 to vector<16x128xf32>
    %7 = arith.maximumf %5, %6 : vector<16x128xf32>
    %c0_6 = arith.constant 0 : index
    %c0_7 = arith.constant 0 : index
    %8 = vector.load %arg5[%c0_6, %c0_7] : memref<1x128xf32, #tpu.memory_space<vmem>>, vector<1x128xf32>
    %c0_8 = arith.constant 0 : index
    %c0_9 = arith.constant 0 : index
    %9 = vector.load %arg4[%c0_8, %c0_9] : memref<128x128xf32, #tpu.memory_space<vmem>>, vector<128x128xf32>
    %cst_10 = arith.constant dense<0.000000e+00> : vector<16x128xf32>
    %10 = tpu.matmul %7, %9, %cst_10 {dimension_numbers = #tpu.dot_dimension_numbers<[1], [0], [0], [1], [0, 0, 1, 1], [], []>} : vector<16x128xf32>, vector<128x128xf32>, vector<16x128xf32> -> vector<16x128xf32>
    %11 = vector.broadcast %8 : vector<1x128xf32> to vector<16x128xf32>
    %12 = arith.addf %11, %10 : vector<16x128xf32>
    %cst_11 = arith.constant 0.000000e+00 : f32
    %13 = vector.broadcast %cst_11 : f32 to vector<16x128xf32>
    %14 = arith.maximumf %12, %13 : vector<16x128xf32>
    %c0_12 = arith.constant 0 : index
    %c0_13 = arith.constant 0 : index
    %15 = vector.load %arg7[%c0_12, %c0_13] : memref<1x128xf32, #tpu.memory_space<vmem>>, vector<1x128xf32>
    %c0_14 = arith.constant 0 : index
    %c0_15 = arith.constant 0 : index
    %16 = vector.load %arg6[%c0_14, %c0_15] : memref<128x128xf32, #tpu.memory_space<vmem>>, vector<128x128xf32>
    %cst_16 = arith.constant dense<0.000000e+00> : vector<16x128xf32>
    %17 = tpu.matmul %14, %16, %cst_16 {dimension_numbers = #tpu.dot_dimension_numbers<[1], [0], [0], [1], [0, 0, 1, 1], [], []>} : vector<16x128xf32>, vector<128x128xf32>, vector<16x128xf32> -> vector<16x128xf32>
    %18 = vector.broadcast %15 : vector<1x128xf32> to vector<16x128xf32>
    %19 = arith.addf %18, %17 : vector<16x128xf32>
    %c0_17 = arith.constant 0 : index
    %c0_18 = arith.constant 0 : index
    %20 = vector.load %arg8[%c0_17, %c0_18] : memref<16x128xf32, #tpu.memory_space<vmem>>, vector<16x128xf32>
    tpu.vector_store %arg8[%c0_17, %c0_18], %19 {strides = array<i32>} : memref<16x128xf32, #tpu.memory_space<vmem>>, vector<16x128xf32>,
    return
  }
  func.func @transform_0(%arg0: i32) -> (i32, i32) {
    %c0_i32 = arith.constant 0 : i32
    %c0_i32_0 = arith.constant 0 : i32
    return %arg0, %c0_i32 : i32, i32
  }
  func.func @transform_1(%arg0: i32) -> (i32, i32) {
    %c0_i32 = arith.constant 0 : i32
    %c0_i32_0 = arith.constant 0 : i32
    %c0_i32_1 = arith.constant 0 : i32
    return %c0_i32, %c0_i32_0 : i32, i32
  }
  func.func @transform_2(%arg0: i32) -> (i32, i32) {
    %c0_i32 = arith.constant 0 : i32
    %c0_i32_0 = arith.constant 0 : i32
    %c0_i32_1 = arith.constant 0 : i32
    return %c0_i32, %c0_i32_0 : i32, i32
  }
  func.func @transform_3(%arg0: i32) -> (i32, i32) {
    %c0_i32 = arith.constant 0 : i32
    %c0_i32_0 = arith.constant 0 : i32
    %c0_i32_1 = arith.constant 0 : i32
    return %c0_i32, %c0_i32_0 : i32, i32
  }
  func.func @transform_4(%arg0: i32) -> (i32, i32) {
    %c0_i32 = arith.constant 0 : i32
    %c0_i32_0 = arith.constant 0 : i32
    %c0_i32_1 = arith.constant 0 : i32
    return %c0_i32, %c0_i32_0 : i32, i32
  }
  func.func @transform_5(%arg0: i32) -> (i32, i32) {
    %c0_i32 = arith.constant 0 : i32
    %c0_i32_0 = arith.constant 0 : i32
    %c0_i32_1 = arith.constant 0 : i32
    return %c0_i32, %c0_i32_0 : i32, i32
  }
  func.func @transform_6(%arg0: i32) -> (i32, i32) {
    %c0_i32 = arith.constant 0 : i32
    %c0_i32_0 = arith.constant 0 : i32
    %c0_i32_1 = arith.constant 0 : i32
    return %c0_i32, %c0_i32_0 : i32, i32
  }
  func.func @transform_7(%arg0: i32) -> (i32, i32) {
    %c0_i32 = arith.constant 0 : i32
    %c0_i32_0 = arith.constant 0 : i32
    return %arg0, %c0_i32 : i32, i32
  }
}

</mosaic_0001>

<bundles_post_ra>
// kernel: tpu_custom_call.1
= control target key start
LH: loop header
LB: loop body
LE: loop exit
PB: predicated region body
PF: predicated region fallthrough
CT: control target
= control target key end

     0   :  { %12 = vsyncpa [#allocation3], 0  ;;  %s937_s0 = inlined_call_operand.hbm [shape: f32[16,128], index: 0, kind: input, shape index: {}]   ;;  %s938_s1 = inlined_call_operand.hbm [shape: f32[128,128], index: 1, kind: input, shape index: {}]   ;;  %s939_s2 = inlined_call_operand.vmem [shape: f32[1,128], index: 2, kind: input, shape index: {}]   ;;  %s940_s3 = inlined_call_operand.hbm [shape: f32[128,128], index: 3, kind: input, shape index: {}]   ;;  %s941_s4 = inlined_call_operand.vmem [shape: f32[1,128], index: 4, kind: input, shape index: {}]   ;;  %s942_s5 = inlined_call_operand.hbm [shape: f32[128,128], index: 5, kind: input, shape index: {}]   ;;  %s943_s6 = inlined_call_operand.vmem [shape: f32[1,128], index: 6, kind: input, shape index: {}]   ;;  %s944_s7 = inlined_call_operand.hbm [shape: f32[16,128], index: 7, kind: output, shape index: {}]  }
   0x1   :  { %13 = vsyncpa [#allocation6], 0 }
   0x2   :  { %14 = vsyncpa [#allocation9], 0 }
   0x3   :  { %15 = vsyncpa [#allocation4], 0  ;;  %s792_s24 = smov [#allocation5]   ;;  %s793_s26 = smov [#allocation2]  }
   0x4   :  { %s33_s25 = sshll.u32 %s792_s24, 4  ;;  %s21_s27 = sshll.u32 %s793_s26, 4  ;;  %s34_s25 = int_to_ptr.vmem [resolvable:$true] %s33_s25  ;;  %s839_s27 = int_to_ptr.vmem [resolvable:$true] %s21_s27 }
   0x5   :  { %s674_s30 = scalar_lea.hbm %s938_s1, 2048 }
   0x6   :  { %p675_p0 = scmp.ne.s32.totalorder %s938_s1, %s674_s30  ;;  %p678_p1 = scmp.lt.u32.totalorder %s674_s30, %s938_s1 }
   0x8   :  { %p680_p2 = pnand %p678_p1, %p675_p0 }
   0xa   :  { %683 = shalt.err (!%p680_p2)
}
   0xb   :  { %s684_s12 = scalar_lea.vmem %s34_s25, 2048  ;;  %p689_p4 = scmp.lt.s32.totalorder %s34_s25, %s34_s25 }
   0xc   :  { %p685_p3 = scmp.ne.s32.totalorder %s34_s25, %s684_s12  ;;  %p690_p5 = scmp.lt.s32.totalorder %s684_s12, %s684_s12 }
   0xe   :  { %p691_p6 = por %p690_p5, %p689_p4 }
  0x10   :  { %p692_p7 = pnand %p691_p6, %p685_p3 }
  0x12   :  { %695 = shalt.err (!%p692_p7)
}
  0x13   :  { %s794_s13 = smov 128   ;;  %s795_s14 = smov 8  }
  0x14   :  { %39 = dma.hbm_to_vmem [thread:$0]  %s938_s1, 2048, %s34_s25, [#allocation6], %s794_s13, %s794_s13, %s795_s14  }
  0x15   :  { %s696_s19 = scalar_lea.hbm %s937_s0, 256 }
  0x16   :  { %p697_p8 = scmp.ne.s32.totalorder %s937_s0, %s696_s19  ;;  %p700_p9 = scmp.lt.u32.totalorder %s696_s19, %s937_s0 }
  0x18   :  { %p702_p10 = pnand %p700_p9, %p697_p8 }
  0x1a   :  { %705 = shalt.err (!%p702_p10)
}
  0x1b   :  { %s706_s24 = scalar_lea.vmem %s839_s27, 256  ;;  %p711_p12 = scmp.lt.s32.totalorder %s839_s27, %s839_s27 }
  0x1c   :  { %p707_p11 = scmp.ne.s32.totalorder %s839_s27, %s706_s24  ;;  %p712_p13 = scmp.lt.s32.totalorder %s706_s24, %s706_s24 }
  0x1e   :  { %p713_p0 = por %p712_p13, %p711_p12 }
  0x20   :  { %p714_p1 = pnand %p713_p0, %p707_p11 }
  0x22   :  { %717 = shalt.err (!%p714_p1)
}
  0x23   :  { %27 = dma.hbm_to_vmem [thread:$0]  %s937_s0, 256, %s839_s27, [#allocation3], %s794_s13, %s794_s13, %s795_s14  }
  0x24   :  { %s796_s26 = smov [#allocation7]   ;;  %s797_s29 = smov [#allocation8]  }
  0x25   :  { %s47_s28 = sshll.u32 %s796_s26, 4  ;;  %s61_s30 = sshll.u32 %s797_s29, 4  ;;  %s48_s28 = int_to_ptr.vmem [resolvable:$true] %s47_s28  ;;  %s876_s30 = int_to_ptr.vmem [resolvable:$true] %s61_s30 }
  0x26   :  { %s718_s10 = scalar_lea.hbm %s940_s3, 2048 }
  0x27   :  { %p719_p2 = scmp.ne.s32.totalorder %s940_s3, %s718_s10  ;;  %p722_p3 = scmp.lt.u32.totalorder %s718_s10, %s940_s3 }
  0x29   :  { %p724_p4 = pnand %p722_p3, %p719_p2 }
  0x2b   :  { %727 = shalt.err (!%p724_p4)
}
  0x2c   :  { %s728_s0 = scalar_lea.vmem %s48_s28, 2048  ;;  %p733_p6 = scmp.lt.s32.totalorder %s48_s28, %s48_s28 }
  0x2d   :  { %p729_p5 = scmp.ne.s32.totalorder %s48_s28, %s728_s0  ;;  %p734_p7 = scmp.lt.s32.totalorder %s728_s0, %s728_s0 }
  0x2f   :  { %p735_p8 = por %p734_p7, %p733_p6 }
  0x31   :  { %p736_p9 = pnand %p735_p8, %p729_p5 }
  0x33   :  { %739 = shalt.err (!%p736_p9)
}
  0x34   :  { %53 = dma.hbm_to_vmem [thread:$0]  %s940_s3, 2048, %s48_s28, [#allocation6], %s794_s13, %s794_s13, %s795_s14  }
  0x35   :  { %s740_s20 = scalar_lea.hbm %s942_s5, 2048 }
  0x36   :  { %p741_p10 = scmp.ne.s32.totalorder %s942_s5, %s740_s20  ;;  %p744_p11 = scmp.lt.u32.totalorder %s740_s20, %s942_s5 }
  0x38   :  { %p746_p12 = pnand %p744_p11, %p741_p10 }
  0x3a   :  { %749 = shalt.err (!%p746_p12)
}
  0x3b   :  { %s750_s1 = scalar_lea.vmem %s876_s30, 2048  ;;  %p755_p0 = scmp.lt.s32.totalorder %s876_s30, %s876_s30 }
  0x3c   :  { %p751_p13 = scmp.ne.s32.totalorder %s876_s30, %s750_s1  ;;  %p756_p1 = scmp.lt.s32.totalorder %s750_s1, %s750_s1 }
  0x3e   :  { %p757_p2 = por %p756_p1, %p755_p0 }
  0x40   :  { %p758_p3 = pnand %p757_p2, %p751_p13 }
  0x42   :  { %761 = shalt.err (!%p758_p3)
}
  0x43   :  { %67 = dma.hbm_to_vmem [thread:$0]  %s942_s5, 2048, %s876_s30, [#allocation9], %s794_s13, %s794_s13, %s795_s14  }
  0x44   :  { %784 = dma.done.wait [#allocation3], 256  }
  0x45   :  { %785 = vsyncadd [#allocation3], 4294967040 }
  0x46   :  { %786 = dma.done.wait [#allocation6], 4096  }
  0x47   :  { %787 = vsyncadd [#allocation6], 4294963200 }
  0x48   :  { %788 = dma.done.wait [#allocation9], 2048  }
  0x49   :  { %789 = vsyncadd [#allocation9], 4294965248  ;;  %v85_v0 = vld [vmem:[#allocation5] sm:$0xff]  ;;  %v86_v1 = vld [vmem:[#allocation5 + $0x8] sm:$0xff]  ;;  %s798_s8 = smov [#allocation10]  }
  0x4a   :  { %v87_v2 = vld [vmem:[#allocation5 + $0x10] sm:$0xff]  ;;  %v571_v3 = vpack.c.bf16 %v86_v1, %v85_v0  ;;  %v88_v4 = vld [vmem:[#allocation5 + $0x18] sm:$0xff]  ;;  %v89_v6 = vld [vmem:[#allocation5 + $0x20] sm:$0xff]  ;;  %s395_s9 = sshll.u32 %s798_s8, 4  ;;  %s396_s9 = int_to_ptr.vmem [resolvable:$true] %s395_s9 }
  0x4b   :  { %v575_v5 = vpack.c.bf16 %v88_v4, %v87_v2  ;;  %v90_v7 = vld [vmem:[#allocation5 + $0x28] sm:$0xff]  ;;  %v91_v9 = vld [vmem:[#allocation5 + $0x30] sm:$0xff]  ;;  %v92_v10 = vld [vmem:[#allocation5 + $0x38] sm:$0xff]  ;;  %p767_p5 = scmp.lt.s32.totalorder %s396_s9, %s396_s9 }
  0x4c   :  { %572 = vmatprep.subr.bf16.mxu0 %v571_v3  ;;  %v579_v8 = vpack.c.bf16 %v90_v7, %v89_v6  ;;  %v82_v11 = vld [vmem:[#allocation2] sm:$0xff]  ;;  %v187_v12 = vld [vmem:[#allocation7] sm:$0xff]  ;;  %v188_v13 = vld [vmem:[#allocation7 + $0x8] sm:$0xff]  ;;  %v583_v20 = vpack.c.bf16 %v92_v10, %v91_v9 }
  0x4d   :  { %574 = vmatpush3.bf16.msra.mxu0 %v571_v3  ;;  %498 = vmatprep.mubr.f32.mxu0 %v82_v11  ;;  %v189_v14 = vld [vmem:[#allocation7 + $0x10] sm:$0xff]  ;;  %v603_v15 = vpack.c.bf16 %v188_v13, %v187_v12  ;;  %v190_v16 = vld [vmem:[#allocation7 + $0x18] sm:$0xff]  ;;  %v191_v18 = vld [vmem:[#allocation7 + $0x20] sm:$0xff] }
  0x4e   :  { %576 = vmatprep.subr.bf16.mxu0 %v575_v5  ;;  %v607_v17 = vpack.c.bf16 %v190_v16, %v189_v14  ;;  %v192_v19 = vld [vmem:[#allocation7 + $0x28] sm:$0xff]  ;;  %v93_v21 = vld [vmem:[#allocation5 + $0x40] sm:$0xff]  ;;  %v193_v24 = vld [vmem:[#allocation7 + $0x30] sm:$0xff] }
  0x4f   :  { %604 = vmatprep.subr.bf16.mxu1 %v603_v15  ;;  %v94_v22 = vld [vmem:[#allocation5 + $0x48] sm:$0xff]  ;;  %v611_v23 = vpack.c.bf16 %v192_v19, %v191_v18  ;;  %v194_v25 = vld [vmem:[#allocation7 + $0x38] sm:$0xff]  ;;  %v95_v27 = vld [vmem:[#allocation5 + $0x50] sm:$0xff] }
  0x50   :  { %606 = vmatpush3.bf16.msra.mxu1 %v603_v15  ;;  %v587_v26 = vpack.c.bf16 %v94_v22, %v93_v21  ;;  %v96_v28 = vld [vmem:[#allocation5 + $0x58] sm:$0xff]  ;;  %v615_v29 = vpack.c.bf16 %v194_v25, %v193_v24  ;;  %v195_v30 = vld [vmem:[#allocation7 + $0x40] sm:$0xff]  ;;  %v196_v31 = vld [vmem:[#allocation7 + $0x48] sm:$0xff] }
  0x51   :  { %578 = vmatpush3.bf16.msra.mxu0 %v575_v5  ;;  %608 = vmatprep.subr.bf16.mxu1 %v607_v17  ;;  %v591_v32 = vpack.c.bf16 %v96_v28, %v95_v27  ;;  %v97_v33 = vld [vmem:[#allocation5 + $0x60] sm:$0xff]  ;;  %v98_v34 = vld [vmem:[#allocation5 + $0x68] sm:$0xff]  ;;  %v619_v35 = vpack.c.bf16 %v196_v31, %v195_v30  ;;  %v197_v36 = vld [vmem:[#allocation7 + $0x50] sm:$0xff] }
  0x52   :  { %580 = vmatprep.subr.bf16.mxu0 %v579_v8  ;;  %v198_v37 = vld [vmem:[#allocation7 + $0x58] sm:$0xff]  ;;  %v595_v38 = vpack.c.bf16 %v98_v34, %v97_v33  ;;  %v99_v39 = vld [vmem:[#allocation5 + $0x70] sm:$0xff]  ;;  %v199_v42 = vld [vmem:[#allocation7 + $0x60] sm:$0xff] }
  0x53   :  { %v100_v40 = vld [vmem:[#allocation5 + $0x78] sm:$0xff]  ;;  %v623_v41 = vpack.c.bf16 %v198_v37, %v197_v36  ;;  %v200_v43 = vld [vmem:[#allocation7 + $0x68] sm:$0xff]  ;;  %v201_v47 = vld [vmem:[#allocation7 + $0x70] sm:$0xff] }
  0x54   :  { %610 = vmatpush3.bf16.msra.mxu1 %v607_v17  ;;  %v599_v44 = vpack.c.bf16 %v100_v40, %v99_v39  ;;  %v627_v45 = vpack.c.bf16 %v200_v43, %v199_v42  ;;  %v83_v46 = vld [vmem:[#allocation2 + $0x8] sm:$0xff]  ;;  %v289_v50 = vld [vmem:[#allocation8] sm:$0xff]  ;;  %v290_v51 = vld [vmem:[#allocation8 + $0x8] sm:$0xff] }
  0x55   :  { %582 = vmatpush3.bf16.msra.mxu0 %v579_v8  ;;  %612 = vmatprep.subr.bf16.mxu1 %v611_v23  ;;  %v202_v48 = vld [vmem:[#allocation7 + $0x78] sm:$0xff]  ;;  %v291_v52 = vld [vmem:[#allocation8 + $0x10] sm:$0xff]  ;;  %v635_v53 = vpack.c.bf16 %v290_v51, %v289_v50  ;;  %v293_v56 = vld [vmem:[#allocation8 + $0x20] sm:$0xff] }
  0x56   :  { %584 = vmatprep.subr.bf16.mxu0 %v583_v20  ;;  %v631_v49 = vpack.c.bf16 %v202_v48, %v201_v47  ;;  %v292_v54 = vld [vmem:[#allocation8 + $0x18] sm:$0xff]  ;;  %v294_v57 = vld [vmem:[#allocation8 + $0x28] sm:$0xff]  ;;  %v295_v59 = vld [vmem:[#allocation8 + $0x30] sm:$0xff] }
  0x57   :  { %v639_v55 = vpack.c.bf16 %v292_v54, %v291_v52  ;;  %v643_v58 = vpack.c.bf16 %v294_v57, %v293_v56  ;;  %v296_v60 = vld [vmem:[#allocation8 + $0x38] sm:$0xff]  ;;  %v297_v62 = vld [vmem:[#allocation8 + $0x40] sm:$0xff]  ;;  %v298_v63 = vld [vmem:[#allocation8 + $0x48] sm:$0xff] }
  0x58   :  { %614 = vmatpush3.bf16.msra.mxu1 %v611_v23  ;;  %v647_v61 = vpack.c.bf16 %v296_v60, %v295_v59  ;;  %v651_v0 = vpack.c.bf16 %v298_v63, %v297_v62  ;;  %v299_v1 = vld [vmem:[#allocation8 + $0x50] sm:$0xff]  ;;  %v300_v2 = vld [vmem:[#allocation8 + $0x58] sm:$0xff]  ;;  %v301_v4 = vld [vmem:[#allocation8 + $0x60] sm:$0xff] }
  0x59   :  { %586 = vmatpush3.bf16.msra.mxu0 %v583_v20  ;;  %616 = vmatprep.subr.bf16.mxu1 %v615_v29  ;;  %v655_v3 = vpack.c.bf16 %v300_v2, %v299_v1  ;;  %v302_v5 = vld [vmem:[#allocation8 + $0x68] sm:$0xff]  ;;  %v409_v7 = vld [vmem:[%s939_s2] ss:$0 sm:$0xff]  ;;  %v304_v15 = vld [vmem:[#allocation8 + $0x78] sm:$0xff] }
  0x5a   :  { %588 = vmatprep.subr.bf16.mxu0 %v587_v26  ;;  %v659_v6 = vpack.c.bf16 %v302_v5, %v301_v4  ;;  %v303_v14 = vld [vmem:[#allocation8 + $0x70] sm:$0xff] }
  0x5b   :  { %v663_v16 = vpack.c.bf16 %v304_v15, %v303_v14  ;;  %v410_v17 = vld [vmem:[%s941_s4] ss:$0 sm:$0xff]  ;;  %s762_s4 = scalar_lea.vmem %s396_s9, 256 }
  0x5c   :  { %618 = vmatpush3.bf16.msra.mxu1 %v615_v29  ;;  %v411_v24 = vld [vmem:[%s943_s6] ss:$0 sm:$0xff]  ;;  %p763_p4 = scmp.ne.s32.totalorder %s396_s9, %s762_s4  ;;  %p768_p6 = scmp.lt.s32.totalorder %s762_s4, %s762_s4 }
  0x5d   :  { %590 = vmatpush3.bf16.msra.mxu0 %v587_v26  ;;  %620 = vmatprep.subr.bf16.mxu1 %v619_v35 }
  0x5e   :  { %592 = vmatprep.subr.bf16.mxu0 %v591_v32  ;;  %p769_p7 = por %p768_p6, %p767_p5 }
  0x60   :  { %622 = vmatpush3.bf16.msra.mxu1 %v619_v35  ;;  %p770_p8 = pnand %p769_p7, %p763_p4 }
  0x61   :  { %594 = vmatpush3.bf16.msra.mxu0 %v591_v32  ;;  %624 = vmatprep.subr.bf16.mxu1 %v623_v41 }
  0x62   :  { %596 = vmatprep.subr.bf16.mxu0 %v595_v38 }
  0x64   :  { %626 = vmatpush3.bf16.msra.mxu1 %v623_v41 }
  0x65   :  { %598 = vmatpush3.bf16.msra.mxu0 %v595_v38  ;;  %628 = vmatprep.subr.bf16.mxu1 %v627_v45 }
  0x66   :  { %600 = vmatprep.subr.bf16.mxu0 %v599_v44 }
  0x68   :  { %630 = vmatpush3.bf16.msra.mxu1 %v627_v45 }
  0x69   :  { %602 = vmatpush3.bf16.msra.mxu0 %v599_v44  ;;  %632 = vmatprep.subr.bf16.mxu1 %v631_v49 }
  0x6a   :  { %636 = vmatprep.subr.bf16.mxu0 %v635_v53 }
  0x6c   :  { %499 = vmatmul.mubr.f32.vlgmr.msra.gmra.mrb[0].mxu0 %v83_v46  ;;  %634 = vmatpush3.bf16.msra.mxu1 %v631_v49 }
  0x6d   :  { %638 = vmatpush3.bf16.msra.mxu0 %v635_v53 }
  0x6e   :  { %640 = vmatprep.subr.bf16.mxu0 %v639_v55 }
  0x71   :  { %642 = vmatpush3.bf16.msra.mxu0 %v639_v55 }
  0x72   :  { %644 = vmatprep.subr.bf16.mxu0 %v643_v58 }
  0x75   :  { %646 = vmatpush3.bf16.msra.mxu0 %v643_v58 }
  0x76   :  { %648 = vmatprep.subr.bf16.mxu0 %v647_v61 }
  0x79   :  { %650 = vmatpush3.bf16.msra.mxu0 %v647_v61 }
  0x7a   :  { %652 = vmatprep.subr.bf16.mxu0 %v651_v0 }
  0x7d   :  { %654 = vmatpush3.bf16.msra.mxu0 %v651_v0 }
  0x7e   :  { %656 = vmatprep.subr.bf16.mxu0 %v655_v3 }
  0x81   :  { %658 = vmatpush3.bf16.msra.mxu0 %v655_v3 }
  0x82   :  { %660 = vmatprep.subr.bf16.mxu0 %v659_v6 }
  0x85   :  { %662 = vmatpush3.bf16.msra.mxu0 %v659_v6 }
  0x86   :  { %664 = vmatprep.subr.bf16.mxu0 %v663_v16 }
  0x89   :  { %666 = vmatpush3.bf16.msra.mxu0 %v663_v16 }
 0x13f   :  { %v500_v8 = vpop.f32.mrb[0].mxu0 }
 0x140   :  { %v183_v9 = vadd.f32 %v500_v8, %v409_v7  ;;  %v167_v10 = vpop.f32.mrb[1].mxu0 }
 0x141   :  { %v182_v11 = vadd.f32 %v409_v7, %v167_v10 }
 0x142   :  { %v185_v13 = vmax.f32 %v183_v9, 0.0 }
 0x143   :  { %v184_v12 = vmax.f32 %v182_v11, 0.0 }
 0x145   :  { %533 = vmatprep.mubr.f32.mxu1 %v184_v12 }
 0x146   :  { %534 = vmatmul.mubr.f32.vlgmr.msra.gmra.mrb[0].mxu1 %v185_v13 }
 0x219   :  { %v535_v18 = vpop.f32.mrb[0].mxu1 }
 0x21a   :  { %v285_v19 = vadd.f32 %v535_v18, %v410_v17  ;;  %v269_v20 = vpop.f32.mrb[1].mxu1 }
 0x21b   :  { %v284_v21 = vadd.f32 %v410_v17, %v269_v20 }
 0x21c   :  { %v287_v23 = vmax.f32 %v285_v19, 0.0 }
 0x21d   :  { %v286_v22 = vmax.f32 %v284_v21, 0.0 }
 0x21f   :  { %568 = vmatprep.mubr.f32.mxu0 %v286_v22 }
 0x220   :  { %569 = vmatmul.mubr.f32.vlgmr.msra.gmra.mrb[2].mxu0 %v287_v23 }
 0x2f3   :  { %v570_v25 = vpop.f32.mrb[2].mxu0 }
 0x2f4   :  { %v387_v26 = vadd.f32 %v570_v25, %v411_v24  ;;  %v371_v27 = vpop.f32.mrb[3].mxu0 }
 0x2f5   :  { %v386_v28 = vadd.f32 %v411_v24, %v371_v27 }
 0x2f6   :  { %389 = vst [vmem:[#allocation10 + $0x8] sm:$0xff] %v387_v26 }
 0x2f7   :  { %388 = vst [vmem:[#allocation10] sm:$0xff] %v386_v28 }
 0x2f8   :  { %773 = shalt.err (!%p770_p8)
}
 0x2f9   :  { %s774_s6 = scalar_lea.hbm %s944_s7, 256 }
 0x2fa   :  { %p775_p9 = scmp.ne.s32.totalorder %s944_s7, %s774_s6  ;;  %p778_p10 = scmp.lt.u32.totalorder %s774_s6, %s944_s7 }
 0x2fc   :  { %p780_p11 = pnand %p778_p10, %p775_p9 }
 0x2fe   :  { %783 = shalt.err (!%p780_p11)
}
 0x2ff   :  { %401 = dma.vmem_to_hbm [thread:$0]  %s396_s9, 256, %s944_s7, [#allocation4], %s794_s13, %s794_s13, %s795_s14  }
 0x300   :  { %790 = dma.done.wait [#allocation4], 256  }
 0x301   :  { %791 = vsyncadd [#allocation4], 4294967040 }
 0x302   :  { %405 = vsyncpa [#allocation3], 1 }
 0x303   :  { %406 = vsyncpa [#allocation6], 1 }
 0x304   :  { %407 = vsyncpa [#allocation9], 1 }
 0x305   :  { %408 = vsyncpa [#allocation4], 1 }

</bundles_post_ra>
